<compile_context>
chip_gen: v6e
topology: v6e:2x2x1
jax: 0.10.0
libtpu: 0.0.40
codegen_flags: <defaults>
</compile_context>

<pallas_src>
import math
import jax
import jax.numpy as jnp
from jax import lax
from jax.experimental import pallas as pl
from jax.experimental.pallas import tpu as pltpu


def _make_merge_kernel(Bb, L, K, D, heads, compute_dtype, eps=1e-5):
    G = heads * K  # stacked per-head query rows

    def kernel(x_ref, q_ref, mask_ref, gamma_ref, beta_ref,
               wkv_ref, wo_ref, bo_ref, out_ref):
        CI = q_ref.shape[-1]                               # 2 * inner (fused kv axis)

        # ---- passthrough: rows [0, L) of the fused output are x itself --------
        x = x_ref[...]                                     # (Bb, L, D)
        out_ref[:, :L, :] = x                              # tile-aligned (L % 8 == 0)

        # ---- LayerNorm on the flattened (Bb*L, D) slab, f32 stats --------------
        xf = x.reshape(Bb * L, D).astype(jnp.float32)
        mu = jnp.mean(xf, axis=-1, keepdims=True)
        var = jnp.mean((xf - mu) * (xf - mu), axis=-1, keepdims=True)
        nx = ((xf - mu) * lax.rsqrt(var + eps)) * gamma_ref[...] + beta_ref[...]
        nx_c = nx.astype(compute_dtype)

        # ---- fused k/v projection: ONE matmul, emitted directly in compute dtype
        kv = jnp.dot(nx_c, wkv_ref[...],
                     preferred_element_type=compute_dtype)  # (Bb*L, 2*inner)
        kv3 = kv.reshape(Bb, L, CI)                         # tile-aligned split (L%8==0)

        # ---- block-diagonal multi-head cross attention (3 matmuls total) -------
        # q_bd row block h holds q_h (scale folded) in the k-half columns of head h,
        # zeros elsewhere -> one batched matmul yields all per-head scores.
        q_b = jnp.broadcast_to(q_ref[...][None], (Bb, G, CI))
        dots = jnp.einsum('bgc,blc->bgl', q_b, kv3,
                          preferred_element_type=jnp.float32)      # (Bb, G, L)
        dots = dots - jnp.max(dots, axis=-1, keepdims=True)
        e = jnp.exp(dots)
        denom = jnp.sum(e, axis=-1, keepdims=True)
        # exact divide in the f32 path (parity with torch softmax); approx EUP
        # reciprocal only in the reduced-precision bf16 path.
        attn = e * pl.reciprocal(denom, approx=(compute_dtype != jnp.float32))

        p = jnp.einsum('bgl,blc->bgc', attn.astype(compute_dtype), kv3,
                       preferred_element_type=compute_dtype)       # (Bb, G, 2*inner)
        # v-head mask keeps only head h's v-columns in row block h (VPU multiply),
        # then one matmul against the fused-axis-padded W_o^T.
        pm = (p * mask_ref[...]).reshape(Bb * G, CI)
        zs = jnp.dot(pm, wo_ref[...],
                     preferred_element_type=jnp.float32)           # (Bb*G, D)
        zs = zs.reshape(Bb, G, D)

        # sum the head row blocks (sublane-aligned static slices, K % 8 == 0)
        z = zs[:, 0:K, :]
        for h in range(1, heads):
            z = z + zs[:, h * K:(h + 1) * K, :]

        out_ref[:, L:, :] = (z + bo_ref[...]).astype(out_ref.dtype)

    return kernel


def prepare_merge_params(params, *, heads, dim_head,
                         compute_dtype=jnp.float32, eps=1e-5):
    """One-time parameter prep (hoisted out of the per-call path):
    pre-compute the batch-independent query path LayerNorm(global_q) @ W_q^T * scale,
    lift it to the block-diagonal form over the FUSED kv axis, build the v-head
    mask, and pre-transpose the fused kv / padded output projection weights."""
    gq = params["global_q"]                               # (1, K, D)
    K, D = gq.shape[1], gq.shape[2]
    inner = heads * dim_head
    ci = 2 * inner
    G = heads * K
    scale = dim_head ** -0.5

    gamma = params["ln_gamma"].reshape(1, D).astype(jnp.float32)
    beta = params["ln_beta"].reshape(1, D).astype(jnp.float32)

    gq2 = gq[0].astype(jnp.float32)                       # (K, D)
    mu = jnp.mean(gq2, axis=-1, keepdims=True)
    var = jnp.mean((gq2 - mu) ** 2, axis=-1, keepdims=True)
    nq = ((gq2 - mu) * lax.rsqrt(var + eps)) * gamma + beta
    q_scaled = (nq @ params["w_q"].astype(jnp.float32).T) * scale   # (K, inner)

    # block-diagonal query + v-head mask on the fused (2*inner) contraction axis
    q_bd = jnp.zeros((G, ci), jnp.float32)
    vmask = jnp.zeros((G, ci), jnp.float32)
    for h in range(heads):
        rows = slice(h * K, (h + 1) * K)
        kcols = slice(h * dim_head, (h + 1) * dim_head)                  # k-half
        vcols = slice(inner + h * dim_head, inner + (h + 1) * dim_head)  # v-half
        q_bd = q_bd.at[rows, kcols].set(q_scaled[:, kcols])
        vmask = vmask.at[rows, vcols].set(1.0)

    # fused, pre-transposed kv projection weight: (D, 2*inner), columns [k | v]
    wkv_t = params["w_kv"].astype(jnp.float32).T
    # output projection lifted onto the fused axis: k-half rows zero, v-half = W_o^T
    wo_pad = jnp.concatenate(
        [jnp.zeros((inner, D), jnp.float32),
         params["w_o"].astype(jnp.float32).T], axis=0)    # (2*inner, D)

    return {
        "q_bd": q_bd.astype(compute_dtype),
        "vmask": vmask.astype(compute_dtype),
        "gamma": gamma,
        "beta": beta,
        "wkv_t": wkv_t.astype(compute_dtype),
        "wo_pad": wo_pad.astype(compute_dtype),
        "bo": params["b_o"].reshape(1, D).astype(jnp.float32),
        "compute_dtype": compute_dtype,
        "K": K,
    }


def _pick_batch_block(B, target=8):
    """Largest divisor of B not exceeding min(target, B//2): amortizes the ~0.35us
    per-grid-step overhead while keeping >= 2 grid steps so both v7x TensorCores
    get work."""
    cap = max(1, min(target, B // 2)) if B >= 2 else 1
    for bb in range(cap, 0, -1):
        if B % bb == 0:
            return bb
    return 1


def merge_forward(x, prep, *, heads, dim_head, batch_block=None):
    """Eval-mode Merge.forward (no_merge=False): cat([x, attn(LN(x), LN(gq))], 1)."""
    B, L, D = x.shape
    K = prep["K"]
    inner = heads * dim_head
    ci = 2 * inner
    G = heads * K
    cd = prep["compute_dtype"]

    # keep both output stores sublane-tile aligned (no masked vst.msk RMW)
    assert L % 8 == 0 and K % 8 == 0, "L and K must be multiples of 8"

    Bb = batch_block if batch_block is not None else _pick_batch_block(B)
    assert B % Bb == 0, "batch block must divide B"
    grid = (B // Bb,)

    kernel = _make_merge_kernel(Bb, L, K, D, heads, cd)

    return pl.pallas_call(
        kernel,
        out_shape=jax.ShapeDtypeStruct((B, L + K, D), x.dtype),
        grid_spec=pltpu.PrefetchScalarGridSpec(
            num_scalar_prefetch=0,
            grid=grid,
            in_specs=[
                pl.BlockSpec((Bb, L, D), lambda b: (b, 0, 0)),   # x (batch block)
                pl.BlockSpec((G, ci), lambda b: (0, 0)),         # block-diag q (hoisted)
                pl.BlockSpec((G, ci), lambda b: (0, 0)),         # v head mask
                pl.BlockSpec((1, D), lambda b: (0, 0)),          # ln gamma
                pl.BlockSpec((1, D), lambda b: (0, 0)),          # ln beta
                pl.BlockSpec((D, ci), lambda b: (0, 0)),         # fused W_kv^T
                pl.BlockSpec((ci, D), lambda b: (0, 0)),         # padded W_o^T
                pl.BlockSpec((1, D), lambda b: (0, 0)),          # b_o
            ],
            out_specs=pl.BlockSpec((Bb, L + K, D), lambda b: (b, 0, 0)),
        ),
        compiler_params=pltpu.CompilerParams(
            dimension_semantics=("parallel",),
            # tiny working set; explicit limit keeps the v7x (64 MiB physical,
            # 32 MiB default scoped) budget honest when shapes grow.
            vmem_limit_bytes=16 * 1024 * 1024,
        ),
    )(x, prep["q_bd"], prep["vmask"], prep["gamma"], prep["beta"],
      prep["wkv_t"], prep["wo_pad"], prep["bo"])


def merge_forward_ref(x, params, *, heads, dim_head, eps=1e-5):
    """Pure-JAX reference replicating the PyTorch eval-mode semantics."""
    def ln(t):
        mu = jnp.mean(t, -1, keepdims=True)
        var = jnp.mean((t - mu) ** 2, -1, keepdims=True)
        return (t - mu) / jnp.sqrt(var + eps) * params["ln_gamma"] + params["ln_beta"]

    inner = heads * dim_head
    B, L, D = x.shape
    nx = ln(x)                                   # (B, L, D)
    nq = ln(params["global_q"])                  # (1, K, D)
    kv = nx @ params["w_kv"].T                   # (B, L, 2*inner)
    k, v = kv[..., :inner], kv[..., inner:]
    q = nq @ params["w_q"].T                     # (1, K, inner)
    K = q.shape[1]
    qh = q.reshape(1, K, heads, dim_head).transpose(0, 2, 1, 3)
    kh = k.reshape(B, L, heads, dim_head).transpose(0, 2, 1, 3)
    vh = v.reshape(B, L, heads, dim_head).transpose(0, 2, 1, 3)
    dots = jnp.einsum("xhqd,bhkd->bhqk", qh, kh) * (dim_head ** -0.5)
    attn = jax.nn.softmax(dots, axis=-1)
    out = jnp.einsum("bhqk,bhkd->bhqd", attn, vh)
    out = out.transpose(0, 2, 1, 3).reshape(B, K, inner)
    z = out @ params["w_o"].T + params["b_o"]
    return jnp.concatenate([x, z], axis=1)


if __name__ == "__main__":
    # small shapes: dim=32, heads=4, dim_head(merge_h_dim)=8 -> inner=32, k=8
    B, L, D = 2, 16, 32
    heads, dim_head, K = 4, 8, 8
    inner = heads * dim_head

    key = jax.random.PRNGKey(0)
    ks = jax.random.split(key, 6)
    # nn.init.uniform_(global_q, -val, val) with val = sqrt(6 / (3*16*16 + dim))
    val = math.sqrt(6.0 / float(3 * 16 * 16 + D))
    params = {
        "global_q": jax.random.uniform(ks[0], (1, K, D), jnp.float32, -val, val),
        "ln_gamma": jnp.ones((D,), jnp.float32),      # nn.LayerNorm default
        "ln_beta": jnp.zeros((D,), jnp.float32),
        "w_kv": jax.random.uniform(ks[1], (2 * inner, D), jnp.float32, -1.0, 1.0) / math.sqrt(D),
        "w_q": jax.random.uniform(ks[2], (inner, D), jnp.float32, -1.0, 1.0) / math.sqrt(D),
        "w_o": jax.random.uniform(ks[3], (D, inner), jnp.float32, -1.0, 1.0) / math.sqrt(inner),
        "b_o": jax.random.uniform(ks[4], (D,), jnp.float32, -1.0, 1.0) / math.sqrt(inner),
    }
    x = jax.random.normal(ks[5], (B, L, D), jnp.float32)

    ref = merge_forward_ref(x, params, heads=heads, dim_head=dim_head)

    # f32 path (default; the right choice on v5e) -- exact softmax divide.
    prep32 = prepare_merge_params(params, heads=heads, dim_head=dim_head,
                                  compute_dtype=jnp.float32)
    out32 = jax.block_until_ready(
        merge_forward(x, prep32, heads=heads, dim_head=dim_head))
    assert out32.shape == (B, L + K, D), out32.shape
    if not jnp.allclose(out32, ref, atol=1e-2, rtol=1e-2):
        raise AssertionError("Pallas f32 output mismatch vs JAX reference")

    # bf16 MXU path (v6e/v7x fast path) -- loose tolerance for reduced precision
    # (values are emitted directly in bf16 from the MXU; single rounding per matmul).
    prep16 = prepare_merge_params(params, heads=heads, dim_head=dim_head,
                                  compute_dtype=jnp.bfloat16)
    out16 = jax.block_until_ready(
        merge_forward(x, prep16, heads=heads, dim_head=dim_head))
    if not jnp.allclose(out16.astype(jnp.float32), ref, atol=1e-1, rtol=1e-1):
        raise AssertionError("Pallas bf16 output mismatch vs JAX reference")

    print("KERNEL_OK")
</pallas_src>

<mosaic_0001>
module attributes {stable_mosaic.version = 11 : i64} {
  func.func @kernel(%arg0: i32, %arg1: memref<1x16x32xf32, #tpu.memory_space<vmem>>, %arg2: memref<32x64xf32, #tpu.memory_space<vmem>>, %arg3: memref<32x64xf32, #tpu.memory_space<vmem>>, %arg4: memref<1x32xf32, #tpu.memory_space<vmem>>, %arg5: memref<1x32xf32, #tpu.memory_space<vmem>>, %arg6: memref<32x64xf32, #tpu.memory_space<vmem>>, %arg7: memref<64x32xf32, #tpu.memory_space<vmem>>, %arg8: memref<1x32xf32, #tpu.memory_space<vmem>>, %arg9: memref<1x24x32xf32, #tpu.memory_space<vmem>>) attributes {dimension_semantics = [#tpu.dimension_semantics<parallel>], iteration_bounds = array<i64: 2>, scalar_prefetch = 0 : i64, scratch_operands = 0 : i64, tpu.core_type = #tpu.core_type<tc>, window_params = [{transform_indices = @transform_0, window_bounds = array<i64: 1, 16, 32>}, {pipeline_mode = #tpu.pipeline_mode<synchronous>, transform_indices = @transform_1, window_bounds = array<i64: 32, 64>}, {pipeline_mode = #tpu.pipeline_mode<synchronous>, transform_indices = @transform_2, window_bounds = array<i64: 32, 64>}, {pipeline_mode = #tpu.pipeline_mode<synchronous>, transform_indices = @transform_3, window_bounds = array<i64: 1, 32>}, {pipeline_mode = #tpu.pipeline_mode<synchronous>, transform_indices = @transform_4, window_bounds = array<i64: 1, 32>}, {pipeline_mode = #tpu.pipeline_mode<synchronous>, transform_indices = @transform_5, window_bounds = array<i64: 32, 64>}, {pipeline_mode = #tpu.pipeline_mode<synchronous>, transform_indices = @transform_6, window_bounds = array<i64: 64, 32>}, {pipeline_mode = #tpu.pipeline_mode<synchronous>, transform_indices = @transform_7, window_bounds = array<i64: 1, 32>}, {transform_indices = @transform_8, window_bounds = array<i64: 1, 24, 32>}]} {
    %c0 = arith.constant 0 : index
    %c0_0 = arith.constant 0 : index
    %c0_1 = arith.constant 0 : index
    %0 = vector.load %arg1[%c0, %c0_0, %c0_1] : memref<1x16x32xf32, #tpu.memory_space<vmem>>, vector<1x16x32xf32>
    %c0_2 = arith.constant 0 : index
    %c0_3 = arith.constant 0 : index
    %c0_4 = arith.constant 0 : index
    %1 = vector.load %arg9[%c0_2, %c0_3, %c0_4] : memref<1x24x32xf32, #tpu.memory_space<vmem>>, vector<1x16x32xf32>
    tpu.vector_store %arg9[%c0_2, %c0_3, %c0_4], %0 {strides = array<i32>} : memref<1x24x32xf32, #tpu.memory_space<vmem>>, vector<1x16x32xf32>,
    %2 = vector.shape_cast %0 : vector<1x16x32xf32> to vector<16x32xf32>
    %cst = arith.constant dense<0.000000e+00> : vector<16xf32>
    %3 = vector.multi_reduction <add>, %2, %cst [1] : vector<16x32xf32> to vector<16xf32>
    %4 = vector.shape_cast %3 : vector<16xf32> to vector<16x1xf32>
    %cst_5 = arith.constant 3.200000e+01 : f32
    %5 = vector.broadcast %cst_5 : f32 to vector<16x1xf32>
    %6 = arith.divf %4, %5 : vector<16x1xf32>
    %7 = vector.broadcast %6 : vector<16x1xf32> to vector<16x32xf32>
    %8 = arith.subf %2, %7 : vector<16x32xf32>
    %9 = vector.broadcast %6 : vector<16x1xf32> to vector<16x32xf32>
    %10 = arith.subf %2, %9 : vector<16x32xf32>
    %11 = arith.mulf %8, %10 : vector<16x32xf32>
    %cst_6 = arith.constant dense<0.000000e+00> : vector<16xf32>
    %12 = vector.multi_reduction <add>, %11, %cst_6 [1] : vector<16x32xf32> to vector<16xf32>
    %13 = vector.shape_cast %12 : vector<16xf32> to vector<16x1xf32>
    %cst_7 = arith.constant 3.200000e+01 : f32
    %14 = vector.broadcast %cst_7 : f32 to vector<16x1xf32>
    %15 = arith.divf %13, %14 : vector<16x1xf32>
    %16 = vector.broadcast %6 : vector<16x1xf32> to vector<16x32xf32>
    %17 = arith.subf %2, %16 : vector<16x32xf32>
    %cst_8 = arith.constant 9.99999974E-6 : f32
    %18 = vector.broadcast %cst_8 : f32 to vector<16x1xf32>
    %19 = arith.addf %15, %18 : vector<16x1xf32>
    %20 = math.rsqrt %19 : vector<16x1xf32>
    %21 = vector.broadcast %20 : vector<16x1xf32> to vector<16x32xf32>
    %22 = arith.mulf %17, %21 : vector<16x32xf32>
    %c0_9 = arith.constant 0 : index
    %c0_10 = arith.constant 0 : index
    %23 = vector.load %arg4[%c0_9, %c0_10] : memref<1x32xf32, #tpu.memory_space<vmem>>, vector<1x32xf32>
    %24 = vector.broadcast %23 : vector<1x32xf32> to vector<16x32xf32>
    %25 = arith.mulf %22, %24 : vector<16x32xf32>
    %c0_11 = arith.constant 0 : index
    %c0_12 = arith.constant 0 : index
    %26 = vector.load %arg5[%c0_11, %c0_12] : memref<1x32xf32, #tpu.memory_space<vmem>>, vector<1x32xf32>
    %27 = vector.broadcast %26 : vector<1x32xf32> to vector<16x32xf32>
    %28 = arith.addf %25, %27 : vector<16x32xf32>
    %c0_13 = arith.constant 0 : index
    %c0_14 = arith.constant 0 : index
    %29 = vector.load %arg6[%c0_13, %c0_14] : memref<32x64xf32, #tpu.memory_space<vmem>>, vector<32x64xf32>
    %cst_15 = arith.constant dense<0.000000e+00> : vector<16x64xf32>
    %30 = tpu.matmul %28, %29, %cst_15 {dimension_numbers = #tpu.dot_dimension_numbers<[1], [0], [0], [1], [0, 0, 1, 1], [], []>} : vector<16x32xf32>, vector<32x64xf32>, vector<16x64xf32> -> vector<16x64xf32>
    %31 = vector.shape_cast %30 : vector<16x64xf32> to vector<1x16x64xf32>
    %c0_16 = arith.constant 0 : index
    %c0_17 = arith.constant 0 : index
    %32 = vector.load %arg2[%c0_16, %c0_17] : memref<32x64xf32, #tpu.memory_space<vmem>>, vector<32x64xf32>
    %33 = vector.shape_cast %32 : vector<32x64xf32> to vector<1x32x64xf32>
    "tpu.trace_start"() <{level = 10 : i32, message = "bgc,blc->bgl"}> : () -> ()
    %cst_18 = arith.constant dense<0.000000e+00> : vector<1x32x16xf32>
    %34 = tpu.matmul %33, %31, %cst_18 {dimension_numbers = #tpu.dot_dimension_numbers<[2], [2], [1], [1], [0, 0, 0, 1, 1, 1], [0], [0]>} : vector<1x32x64xf32>, vector<1x16x64xf32>, vector<1x32x16xf32> -> vector<1x32x16xf32>
    "tpu.trace_stop"() : () -> ()
    %cst_19 = arith.constant dense<0xFF800000> : vector<1x32xf32>
    %35 = vector.multi_reduction <maximumf>, %34, %cst_19 [2] : vector<1x32x16xf32> to vector<1x32xf32>
    %36 = vector.shape_cast %35 : vector<1x32xf32> to vector<1x32x1xf32>
    %37 = vector.broadcast %36 : vector<1x32x1xf32> to vector<1x32x16xf32>
    %38 = arith.subf %34, %37 : vector<1x32x16xf32>
    %39 = math.exp %38 : vector<1x32x16xf32>
    %cst_20 = arith.constant dense<0.000000e+00> : vector<1x32xf32>
    %40 = vector.multi_reduction <add>, %39, %cst_20 [2] : vector<1x32x16xf32> to vector<1x32xf32>
    %41 = vector.shape_cast %40 : vector<1x32xf32> to vector<1x32x1xf32>
    %42 = tpu.reciprocal %41 : vector<1x32x1xf32> -> vector<1x32x1xf32>
    %43 = vector.broadcast %42 : vector<1x32x1xf32> to vector<1x32x16xf32>
    %44 = arith.mulf %39, %43 : vector<1x32x16xf32>
    "tpu.trace_start"() <{level = 10 : i32, message = "bgl,blc->bgc"}> : () -> ()
    %cst_21 = arith.constant dense<0.000000e+00> : vector<1x32x64xf32>
    %45 = tpu.matmul %44, %31, %cst_21 {dimension_numbers = #tpu.dot_dimension_numbers<[2], [1], [1], [2], [0, 0, 0, 1, 1, 2], [0], [0]>} : vector<1x32x16xf32>, vector<1x16x64xf32>, vector<1x32x64xf32> -> vector<1x32x64xf32>
    "tpu.trace_stop"() : () -> ()
    %c0_22 = arith.constant 0 : index
    %c0_23 = arith.constant 0 : index
    %46 = vector.load %arg3[%c0_22, %c0_23] : memref<32x64xf32, #tpu.memory_space<vmem>>, vector<32x64xf32>
    %47 = vector.shape_cast %46 : vector<32x64xf32> to vector<1x32x64xf32>
    %48 = arith.mulf %45, %47 : vector<1x32x64xf32>
    %49 = vector.shape_cast %48 : vector<1x32x64xf32> to vector<32x64xf32>
    %c0_24 = arith.constant 0 : index
    %c0_25 = arith.constant 0 : index
    %50 = vector.load %arg7[%c0_24, %c0_25] : memref<64x32xf32, #tpu.memory_space<vmem>>, vector<64x32xf32>
    %cst_26 = arith.constant dense<0.000000e+00> : vector<32x32xf32>
    %51 = tpu.matmul %49, %50, %cst_26 {dimension_numbers = #tpu.dot_dimension_numbers<[1], [0], [0], [1], [0, 0, 1, 1], [], []>} : vector<32x64xf32>, vector<64x32xf32>, vector<32x32xf32> -> vector<32x32xf32>
    %52 = vector.shape_cast %51 : vector<32x32xf32> to vector<1x32x32xf32>
    %53 = vector.extract_strided_slice %52 {offsets = [0, 0, 0], sizes = [1, 8, 32], strides = [1, 1, 1]} : vector<1x32x32xf32> to vector<1x8x32xf32>
    %54 = vector.extract_strided_slice %52 {offsets = [0, 8, 0], sizes = [1, 8, 32], strides = [1, 1, 1]} : vector<1x32x32xf32> to vector<1x8x32xf32>
    %55 = arith.addf %53, %54 : vector<1x8x32xf32>
    %56 = vector.extract_strided_slice %52 {offsets = [0, 16, 0], sizes = [1, 8, 32], strides = [1, 1, 1]} : vector<1x32x32xf32> to vector<1x8x32xf32>
    %57 = arith.addf %55, %56 : vector<1x8x32xf32>
    %58 = vector.extract_strided_slice %52 {offsets = [0, 24, 0], sizes = [1, 8, 32], strides = [1, 1, 1]} : vector<1x32x32xf32> to vector<1x8x32xf32>
    %59 = arith.addf %57, %58 : vector<1x8x32xf32>
    %c0_27 = arith.constant 0 : index
    %c0_28 = arith.constant 0 : index
    %60 = vector.load %arg8[%c0_27, %c0_28] : memref<1x32xf32, #tpu.memory_space<vmem>>, vector<1x32xf32>
    %61 = vector.shape_cast %60 : vector<1x32xf32> to vector<1x1x32xf32>
    %62 = vector.broadcast %61 : vector<1x1x32xf32> to vector<1x8x32xf32>
    %63 = arith.addf %59, %62 : vector<1x8x32xf32>
    %c0_29 = arith.constant 0 : index
    %c16 = arith.constant 16 : index
    %c0_30 = arith.constant 0 : index
    %64 = vector.load %arg9[%c0_29, %c16, %c0_30] : memref<1x24x32xf32, #tpu.memory_space<vmem>>, vector<1x8x32xf32>
    tpu.vector_store %arg9[%c0_29, %c16, %c0_30], %63 {strides = array<i32>} : memref<1x24x32xf32, #tpu.memory_space<vmem>>, vector<1x8x32xf32>,
    return
  }
  func.func @transform_0(%arg0: i32) -> (i32, i32, i32) {
    %c0_i32 = arith.constant 0 : i32
    %c0_i32_0 = arith.constant 0 : i32
    %c0_i32_1 = arith.constant 0 : i32
    return %arg0, %c0_i32, %c0_i32_0 : i32, i32, i32
  }
  func.func @transform_1(%arg0: i32) -> (i32, i32) {
    %c0_i32 = arith.constant 0 : i32
    %c0_i32_0 = arith.constant 0 : i32
    %c0_i32_1 = arith.constant 0 : i32
    return %c0_i32, %c0_i32_0 : i32, i32
  }
  func.func @transform_2(%arg0: i32) -> (i32, i32) {
    %c0_i32 = arith.constant 0 : i32
    %c0_i32_0 = arith.constant 0 : i32
    %c0_i32_1 = arith.constant 0 : i32
    return %c0_i32, %c0_i32_0 : i32, i32
  }
  func.func @transform_3(%arg0: i32) -> (i32, i32) {
    %c0_i32 = arith.constant 0 : i32
    %c0_i32_0 = arith.constant 0 : i32
    %c0_i32_1 = arith.constant 0 : i32
    return %c0_i32, %c0_i32_0 : i32, i32
  }
  func.func @transform_4(%arg0: i32) -> (i32, i32) {
    %c0_i32 = arith.constant 0 : i32
    %c0_i32_0 = arith.constant 0 : i32
    %c0_i32_1 = arith.constant 0 : i32
    return %c0_i32, %c0_i32_0 : i32, i32
  }
  func.func @transform_5(%arg0: i32) -> (i32, i32) {
    %c0_i32 = arith.constant 0 : i32
    %c0_i32_0 = arith.constant 0 : i32
    %c0_i32_1 = arith.constant 0 : i32
    return %c0_i32, %c0_i32_0 : i32, i32
  }
  func.func @transform_6(%arg0: i32) -> (i32, i32) {
    %c0_i32 = arith.constant 0 : i32
    %c0_i32_0 = arith.constant 0 : i32
    %c0_i32_1 = arith.constant 0 : i32
    return %c0_i32, %c0_i32_0 : i32, i32
  }
  func.func @transform_7(%arg0: i32) -> (i32, i32) {
    %c0_i32 = arith.constant 0 : i32
    %c0_i32_0 = arith.constant 0 : i32
    %c0_i32_1 = arith.constant 0 : i32
    return %c0_i32, %c0_i32_0 : i32, i32
  }
  func.func @transform_8(%arg0: i32) -> (i32, i32, i32) {
    %c0_i32 = arith.constant 0 : i32
    %c0_i32_0 = arith.constant 0 : i32
    %c0_i32_1 = arith.constant 0 : i32
    return %arg0, %c0_i32, %c0_i32_0 : i32, i32, i32
  }
}

</mosaic_0001>

<bundles_post_ra>
// kernel: tpu_custom_call.1
= control target key start
LH: loop header
LB: loop body
LE: loop exit
PB: predicated region body
PF: predicated region fallthrough
CT: control target
= control target key end

     0   :  { %13 = vsyncpa [#allocation3], 0  ;;  %s1470_s0 = inlined_call_operand.vmem [shape: f32[2,16,32], index: 0, kind: input, shape index: {}]   ;;  %s1471_s1 = inlined_call_operand.vmem [shape: f32[32,64], index: 1, kind: input, shape index: {}]   ;;  %s1472_s2 = inlined_call_operand.vmem [shape: f32[32,64], index: 2, kind: input, shape index: {}]   ;;  %s1473_s3 = inlined_call_operand.vmem [shape: f32[1,32], index: 3, kind: input, shape index: {}]   ;;  %s1474_s4 = inlined_call_operand.vmem [shape: f32[1,32], index: 4, kind: input, shape index: {}]   ;;  %s1475_s5 = inlined_call_operand.hbm [shape: f32[32,64], index: 5, kind: input, shape index: {}]   ;;  %s1476_s6 = inlined_call_operand.vmem [shape: f32[64,32], index: 6, kind: input, shape index: {}]   ;;  %s1477_s7 = inlined_call_operand.vmem [shape: f32[1,32], index: 7, kind: input, shape index: {}]   ;;  %s1478_s8 = inlined_call_operand.hbm [shape: f32[2,24,32], index: 8, kind: output, shape index: {}]  }
   0x1   :  { %14 = vsyncpa [#allocation4], 0 }
   0x2   :  { %16 = vsyncpa [#allocation4 + $0x1], 0  ;;  %s1250_s27 = smov 0   ;;  %s1252_s28 = smov 0  }
   0x3   :  { %s1254_s29 = smov 0   ;;  %s1256_s30 = smov 0  }
   0x4 LB: > { %s1271_s9 = sadd.s32 4294967295, %s1197_s30   ;;  %s917_s10 = sadd.s32 4294967294, %s1197_s30   ;;  %s1197_s30 = sphi %s1256_s30, %s1486_s30   ;;  %s1193_s29 = sphi %s1254_s29, %s1485_s29   ;;  %s1189_s28 = sphi %s1252_s28, %s1484_s28   ;;  %s1185_s27 = sphi %s1250_s27, %s1483_s27  }
   0x5   : > { %s1275_s11 = sadd.s32 1, %s1197_s30   ;;  %s202_s12 = sadd.s32 1, %s1193_s29 }
   0x6   : > { %s199_s13 = ssub.s32 %s1197_s30, %s1275_s11  ;;  %p212_p0 = scmp.ne.s32.totalorder %s1193_s29, %s1189_s28 }
   0x7   : > { %p200_p1 = scmp.eq.s32.totalorder %s199_s13, 0  ;;  %p213_p2 = scmp.eq.s32.totalorder %s1271_s9, 1 }
   0x8   : > { %p218_p3 = scmp.ne.s32.totalorder %s1189_s28, %s1185_s27  ;;  %p219_p4 = scmp.eq.s32.totalorder %s917_s10, 1 }
   0x9   : > { %s1286_s14 = scalar_select %p200_p1, %s1193_s29, %s202_s12  }
   0xa   : > { %p1288_p5 = por %p213_p2, %p212_p0  ;;  %p1292_p6 = por %p219_p4, %p218_p3 }
   0xb   : > { %p918_p7 = scmp.ge.s32.totalorder %s1197_s30, 1  ;;  %p226_p8 = scmp.lt.s32.totalorder %s1197_s30, 3 }
   0xc   : > { %s1480_s16 = scalar_select %p1292_p6, 1, 0 }
   0xd   : > { %p1047_p9 = scmp.eq.s32.totalorder %s1271_s9, 0  ;;  %p1299_p10 = pnand %p918_p7, %p226_p8 }
   0xe   : > { %s1199_s18 = smov [#allocation2]  }
   0xf   : > { %s250_s19 = sshll.u32 %s1199_s18, 4  ;;  %p1039_p11 = pneg %p1299_p10  ;;  %s251_s19 = int_to_ptr.vmem [resolvable:$true] %s250_s19 }
  0x10   : > { %s1118_s20 = scalar_lea.vmem %s251_s19, 512  ;;  %p1126_p3 = scmp.lt.s32.totalorder %s251_s19, %s251_s19 }
  0x11   : > { %p1040_p12 = pnand %p1047_p9, %p1039_p11  ;;  %p1119_p0 = scmp.ne.s32.totalorder %s251_s19, %s1118_s20 }
  0x12   : > { %p1127_p4 = scmp.lt.s32.totalorder %s1118_s20, %s1118_s20 }
  0x13   : > { %p1109_p13 = pneg %p1040_p12 }
  0x14   : > { %p1128_p6 = por %p1127_p4, %p1126_p3 }
  0x15   : > { %p1121_p1 = pnand %p1119_p0, %p1109_p13 }
  0x17   : > { %p1122_p2 = pneg %p1121_p1 }
  0x19   : > { %p1129_p7 = pnand %p1128_p6, %p1122_p2 }
  0x1b   : > { %1132 = shalt.err (!%p1129_p7)
}
  0x1c   : > { %s1200_s21 = smov 128   ;;  %s1201_s22 = smov 8  }
  0x1d   : > { %1042 = dma.hbm_to_vmem [thread:$0]  (!%p1040_p12), %s1475_s5, 512, %s251_s19, [#allocation3], %s1200_s21, %s1200_s21, %s1201_s22  }
  0x1e   : > { %280 = sbr.rel (%p1299_p10) target bundleno = 1481 (0x5c9), region = 52 }
  0x23   : > { %1176 = dma.done.wait (%p1047_p9), [#allocation3], 512  }
  0x24   : > { %1178 = vsyncadd (%p1047_p9), [#allocation3], 4294966784  ;;  %s311_s25 = sand.u32 1, %s1189_s28   ;;  %p314_p6 = scmp.lt.s32.totalorder %s1271_s9, 1  ;;  %vm321_vm0 = vcmask 261120   ;;  %v372_v14 = vld [vmem:[#allocation2 + $0x18] sm:$0xff] }
  0x25   : > { %s1031_s26 = smul.u32 24, %s311_s25  ;;  %v371_v15 = vld [vmem:[#allocation2 + $0x10] sm:$0xff]  ;;  %978 = vmatprep.subr.mxu0 %v372_v14  ;;  %v370_v16 = vld [vmem:[#allocation2 + $0x8] sm:$0xff]  ;;  %v369_v17 = vld [vmem:[#allocation2] sm:$0xff]  ;;  %vm458_vm1 = vcmask 523264   ;;  %vm562_vm2 = vcmask 130048  }
  0x26   : > { %s315_s10 = scalar_select %p314_p6, %s1271_s9, 1  ;;  %979 = vmatpush3.msra.mxu0 %v372_v14  ;;  %v925_v25 = vld [vmem:[%s1473_s3] ss:$0 sm:$0xff]  ;;  %v455_v37 = vld [vmem:[%s1471_s1 + $0x8] sm:$0xff]  ;;  %v456_v38 = vld [vmem:[%s1471_s1 + $0x10] sm:$0xff] }
  0x27   : > { %s1325_s19 = scalar_lea.vmem [#allocation5], %s1031_s26  ;;  %980 = vmatprep.subr.mxu0 %v371_v15  ;;  %v926_v27 = vld [vmem:[%s1474_s4] ss:$0 sm:$0xff]  ;;  %v457_v39 = vld [vmem:[%s1471_s1 + $0x18] sm:$0xff]  ;;  %s1032_s23 = smul.u32 384, %s1271_s9 }
  0x28   : > { %s947_s12 = sshll.u32 %s315_s10, 4  ;;  %981 = vmatpush3.msra.mxu0 %v371_v15  ;;  %v454_v34 = vld [vmem:[%s1471_s1] sm:$0xff]  ;;  %s843_s24 = sshll.u32 %s1325_s19, 4  ;;  %s1419_s24 = int_to_ptr.vmem [resolvable:$true] %s843_s24 }
  0x29   : > { %s318_s17 = scalar_lea.vmem %s1470_s0, %s947_s12  ;;  %982 = vmatprep.subr.mxu0 %v370_v16  ;;  %993 = vmatprep.mubr.msk.f32.mxu1 %vm458_vm1, %v454_v34  ;;  %s1424_s18 = scalar_lea.hbm %s1478_s8, %s1032_s23 }
  0x2a   : > { %v319_v0 = vld [vmem:[%s318_s17] sm:$0xff]  ;;  %v320_v1 = vld [vmem:[%s318_s17 + $0x8] sm:$0xff]  ;;  %983 = vmatpush3.msra.mxu0 %v370_v16  ;;  %s1430_s9 = scalar_lea.sflag [#allocation4], %s311_s25  ;;  %s1133_s17 = scalar_lea.vmem %s1419_s24, 384 }
  0x2b   : > { %v324_v2 = vsel %vm321_vm0, %v319_v0, 0.0  ;;  %322 = vst.msk [vmem:[%s1325_s19] sm:$0xff] %vm321_vm0, %v319_v0  ;;  %323 = vst.msk [vmem:[%s1325_s19 + $0x8] sm:$0xff] %vm321_vm0, %v320_v1  ;;  %v327_v3 = vsel %vm321_vm0, %v320_v1, 0.0  ;;  %984 = vmatprep.subr.mxu0 %v369_v17  ;;  %p1134_p8 = scmp.ne.s32.totalorder %s1419_s24, %s1133_s17  ;;  %s1202_s20 = smov [#allocation5]  }
  0x2c   : > { %325 = vadd.xlane.f32.xlu0 %v324_v2  ;;  %985 = vmatpush3.msra.mxu0 %v369_v17  ;;  %s1137_s21 = sshll.u32 %s1202_s20, 4  ;;  %s1138_s21 = int_to_ptr.vmem [resolvable:$false] %s1137_s21 }
  0x2d   : > { %p1135_p9 = pnand %p1134_p8, %p1288_p5  ;;  %s1139_s22 = scalar_lea.vmem %s1138_s21, 768 }
  0x2e   : > { %p1140_p11 = scmp.lt.s32.totalorder %s1419_s24, %s1138_s21  ;;  %p1141_p12 = scmp.lt.s32.totalorder %s1139_s22, %s1133_s17 }
  0x2f   : > { %p1136_p10 = pneg %p1135_p9 }
  0x30   : > { %328 = vadd.xlane.f32.xlu0 %v327_v3  ;;  %p1142_p13 = por %p1141_p12, %p1140_p11 }
  0x32   : > { %p1143_p0 = pnand %p1142_p13, %p1136_p10 }
  0xb5   : > { %v326_v4 = vpop.xlane.xlu0 %325 }
  0xb6   : > { %v331_v5 = vmul.f32 0.03125, %v326_v4  ;;  %v719_v4 = vld [vmem:[%s1476_s6 + $0x38] sm:$0xff] }
  0xb8   : > { %v333_v6 = vsub.f32 %v319_v0, %v331_v5  ;;  %v718_v5 = vld [vmem:[%s1476_s6 + $0x30] sm:$0xff] }
  0xb9   : > { %v329_v7 = vpop.xlane.xlu0 %328 }
  0xba   : > { %v332_v8 = vmul.f32 0.03125, %v329_v7  ;;  %v335_v9 = vmul.f32 %v333_v6, %v333_v6  ;;  %v716_v7 = vld [vmem:[%s1476_s6 + $0x20] sm:$0xff] }
  0xbc   : > { %v334_v10 = vsub.f32 %v320_v1, %v332_v8  ;;  %v337_v11 = vsel %vm321_vm0, %v335_v9, 0.0  ;;  %v715_v8 = vld [vmem:[%s1476_s6 + $0x18] sm:$0xff] }
  0xbd   : > { %338 = vadd.xlane.f32.xlu1 %v337_v11 }
  0xbe   : > { %v336_v12 = vmul.f32 %v334_v10, %v334_v10 }
  0xc0   : > { %v340_v13 = vsel %vm321_vm0, %v336_v12, 0.0 }
  0xc1   : > { %341 = vadd.xlane.f32.xlu1 %v340_v13 }
 0x146   : > { %v339_v18 = vpop.xlane.xlu1 %338 }
 0x147   : > { %v343_v19 = vmul.f32 0.03125, %v339_v18 }
 0x149   : > { %v345_v20 = vadd.f32 1e-05, %v343_v19 }
 0x14a   : > { %v342_v21 = vpop.xlane.xlu1 %341 }
 0x14b   : > { %1087 = vrsqrt.f32 %v345_v20  ;;  %v344_v22 = vmul.f32 0.03125, %v342_v21  ;;  %v714_v21 = vld [vmem:[%s1476_s6 + $0x10] sm:$0xff] }
 0x14d   : > { %v346_v23 = vadd.f32 1e-05, %v344_v22  ;;  %v713_v22 = vld [vmem:[%s1476_s6 + $0x8] sm:$0xff] }
 0x14f   : > { %1089 = vrsqrt.f32 %v346_v23  ;;  %v712_v23 = vld [vmem:[%s1476_s6] sm:$0xff] }
 0x158   : > { %v1088_v24 = vpop.eup %1087 }
 0x159   : > { %v349_v26 = vmul.f32 %v1088_v24, %v333_v6  ;;  %v717_v6 = vld [vmem:[%s1476_s6 + $0x28] sm:$0xff] }
 0x15b   : > { %v358_v28 = vmul.f32 %v925_v25, %v349_v26  ;;  %v705_v26 = vld [vmem:[%s1472_s2 + $0x8] sm:$0xff] }
 0x15c   : > { %v1090_v29 = vpop.eup %1089 }
 0x15d   : > { %v350_v30 = vmul.f32 %v1090_v29, %v334_v10  ;;  %v367_v31 = vadd.f32 %v926_v27, %v358_v28 }
 0x15f   : > { %v359_v32 = vmul.f32 %v925_v25, %v350_v30  ;;  %986 = vmatprep.mubr.msk.f32.mxu0 %vm321_vm0, %v367_v31  ;;  %v704_v25 = vld [vmem:[%s1472_s2] sm:$0xff]  ;;  %v706_v31 = vld [vmem:[%s1472_s2 + $0x10] sm:$0xff] }
 0x161   : > { %v368_v33 = vadd.f32 %v926_v27, %v359_v32  ;;  %v707_v32 = vld [vmem:[%s1472_s2 + $0x18] sm:$0xff] }
 0x163   : > { %987 = vmatmul.mubr.msk.f32.vlgmr.msra.gmra.mxu0 %vm321_vm0, %v368_v33 }
 0x223   : > { %v988_v35 = vpop.f32.mrf.mxu0 }
 0x224   : > { %989 = vmatprep.subr.msk.mxu1 %vm458_vm1, %v988_v35  ;;  %999 = vmatprep.subr.mxu0 %v988_v35 }
 0x225   : > { %v445_v36 = vpop.f32.mrf.mxu0  ;;  %990 = vmatpush3.xpose.msk.msra.mxu1 %vm458_vm1, %v988_v35  ;;  %1000 = vmatpush3.msra.mxu0 %v988_v35 }
 0x226   : > { %991 = vmatprep.subr.msk.mxu1 %vm458_vm1, %v445_v36  ;;  %1001 = vmatprep.subr.mxu0 %v445_v36 }
 0x227   : > { %1002 = vmatpush3.msra.mxu0 %v445_v36 }
 0x229   : > { %992 = vmatpush3.xpose.msk.msra.mxu1 %vm458_vm1, %v445_v36 }
 0x22a   : > { %1009 = vmatprep.subr.mxu1 %v719_v4 }
 0x22c   : > { %994 = vmatmul.mubr.msk.f32.vlgmr.msra.gmra.mxu1 %vm458_vm1, %v455_v37 }
 0x22d   : > { %996 = vmatprep.mubr.msk.f32.mxu1 %vm458_vm1, %v456_v38  ;;  %1010 = vmatpush3.msra.mxu1 %v719_v4 }
 0x22e   : > { %1011 = vmatprep.subr.mxu1 %v718_v5 }
 0x22f   : > { %1012 = vmatpush3.msra.mxu1 %v718_v5 }
 0x230   : > { %997 = vmatmul.mubr.msk.f32.gmra.mxu1 %vm458_vm1, %v457_v39  ;;  %1013 = vmatprep.subr.mxu1 %v717_v6 }
 0x231   : > { %1014 = vmatpush3.msra.mxu1 %v717_v6 }
 0x232   : > { %1015 = vmatprep.subr.mxu1 %v716_v7 }
 0x233   : > { %1016 = vmatpush3.msra.mxu1 %v716_v7 }
 0x234   : > { %1017 = vmatprep.subr.mxu1 %v715_v8 }
 0x235   : > { %1018 = vmatpush3.msra.mxu1 %v715_v8 }
 0x236   : > { %1019 = vmatprep.subr.mxu1 %v714_v21 }
 0x237   : > { %1020 = vmatpush3.msra.mxu1 %v714_v21 }
 0x238   : > { %1021 = vmatprep.subr.mxu1 %v713_v22 }
 0x239   : > { %1022 = vmatpush3.msra.mxu1 %v713_v22 }
 0x23a   : > { %1023 = vmatprep.subr.mxu1 %v712_v23 }
 0x23b   : > { %1024 = vmatpush3.msra.mxu1 %v712_v23 }
 0x2ec   : > { %v995_v40 = vpop.f32.mrf.mxu1 }
 0x2ed   : > { %v566_v41 = vsel %vm562_vm2, %v995_v40, -inf }
 0x2ee   : > { %567 = vmax.xlane.f32.xlu1 %v566_v41  ;;  %v543_v42 = vpop.f32.mrf.mxu1 }
 0x2ef   : > { %v563_v43 = vsel %vm562_vm2, %v543_v42, -inf }
 0x2f0   : > { %564 = vmax.xlane.f32.xlu0 %v563_v43  ;;  %v998_v44 = vpop.f32.mrf.mxu1 }
 0x2f1   : > { %v572_v45 = vsel %vm562_vm2, %v998_v44, -inf }
 0x2f2   : > { %573 = vmax.xlane.f32.xlu1 %v572_v45  ;;  %v553_v46 = vpop.f32.mrf.mxu1 }
 0x2f3   : > { %v569_v47 = vsel %vm562_vm2, %v553_v46, -inf }
 0x2f4   : > { %570 = vmax.xlane.f32.xlu0 %v569_v47 }
 0x377   : > { %v568_v48 = vpop.xlane.xlu1 %567 }
 0x378   : > { %v576_v49 = vsub.f32 %v995_v40, %v568_v48 }
 0x379   : > { %v565_v50 = vpop.xlane.xlu0 %564 }
 0x37a   : > { %v581_v51 = vmul.f32 1.442695, %v576_v49  ;;  %v575_v52 = vsub.f32 %v543_v42, %v565_v50  ;;  %v943_v42 = vld [vmem:[%s1477_s7] ss:$0 sm:$0xff] }
 0x37b   : > { %v574_v53 = vpop.xlane.xlu1 %573 }
 0x37c   : > { %1091 = vpow2.f32 %v581_v51  ;;  %v579_v54 = vmul.f32 1.442695, %v575_v52  ;;  %v578_v55 = vsub.f32 %v998_v44, %v574_v53 }
 0x37d   : > { %v571_v56 = vpop.xlane.xlu0 %570 }
 0x37e   : > { %1093 = vpow2.f32 %v579_v54  ;;  %v585_v57 = vmul.f32 1.442695, %v578_v55  ;;  %v577_v58 = vsub.f32 %v553_v46, %v571_v56 }
 0x380   : > { %1095 = vpow2.f32 %v585_v57  ;;  %v583_v59 = vmul.f32 1.442695, %v577_v58 }
 0x382   : > { %1097 = vpow2.f32 %v583_v59 }
 0x389   : > { %v1092_v60 = vpop.eup %1091 }
 0x38a   : > { %v590_v61 = vsel %vm562_vm2, %v1092_v60, 0.0 }
 0x38b   : > { %v1094_v62 = vpop.eup %1093  ;;  %591 = vadd.xlane.f32.xlu1 %v590_v61 }
 0x38c   : > { %v587_v63 = vsel %vm562_vm2, %v1094_v62, 0.0 }
 0x38d   : > { %v1096_v0 = vpop.eup %1095  ;;  %588 = vadd.xlane.f32.xlu0 %v587_v63 }
 0x38e   : > { %v596_v1 = vsel %vm562_vm2, %v1096_v0, 0.0 }
 0x38f   : > { %v1098_v2 = vpop.eup %1097  ;;  %597 = vadd.xlane.f32.xlu1 %v596_v1 }
 0x390   : > { %v593_v3 = vsel %vm562_vm2, %v1098_v2, 0.0 }
 0x391   : > { %594 = vadd.xlane.f32.xlu0 %v593_v3 }
 0x414   : > { %v592_v9 = vpop.xlane.xlu1 %591 }
 0x415   : > { %1099 = vrcp.f32 %v592_v9 }
 0x416   : > { %v589_v10 = vpop.xlane.xlu0 %588 }
 0x417   : > { %1101 = vrcp.f32 %v589_v10 }
 0x418   : > { %v598_v11 = vpop.xlane.xlu1 %597 }
 0x419   : > { %1103 = vrcp.f32 %v598_v11 }
 0x41a   : > { %v595_v12 = vpop.xlane.xlu0 %594 }
 0x41b   : > { %1105 = vrcp.f32 %v595_v12 }
 0x422   : > { %v1100_v13 = vpop.eup %1099 }
 0x423   : > { %v604_v16 = vmul.f32 %v1100_v13, %v1092_v60 }
 0x424   : > { %v1102_v14 = vpop.eup %1101 }
 0x425   : > { %v603_v15 = vmul.f32 %v1102_v14, %v1094_v62 }
 0x426   : > { %v1104_v17 = vpop.eup %1103 }
 0x427   : > { %1003 = vmatprep.mubr.msk.f32.mxu0 %vm562_vm2, %v603_v15  ;;  %v606_v20 = vmul.f32 %v1104_v17, %v1096_v0 }
 0x428   : > { %v1106_v18 = vpop.eup %1105  ;;  %1004 = vmatmul.mubr.msk.f32.vlgmr.msra.gmra.mxu0 %vm562_vm2, %v604_v16 }
 0x429   : > { %v605_v19 = vmul.f32 %v1106_v18, %v1098_v2 }
 0x42b   : > { %1006 = vmatprep.mubr.msk.f32.mxu0 %vm562_vm2, %v605_v19 }
 0x42c   : > { %1007 = vmatmul.mubr.msk.f32.gmra.mxu0 %vm562_vm2, %v606_v20 }
 0x4e8   : > { %v1005_v24 = vpop.f32.mrf.mxu0 }
 0x4e9   : > { %v709_v29 = vmul.f32 %v1005_v24, %v705_v26 }
 0x4ea   : > { %v685_v27 = vpop.f32.mrf.mxu0 }
 0x4eb   : > { %v708_v28 = vmul.f32 %v704_v25, %v685_v27 }
 0x4ec   : > { %v1008_v30 = vpop.f32.mrf.mxu0 }
 0x4ed   : > { %1025 = vmatprep.mubr.msk.f32.mxu1 %vm458_vm1, %v708_v28  ;;  %v711_v35 = vmul.f32 %v1008_v30, %v707_v32 }
 0x4ee   : > { %v695_v33 = vpop.f32.mrf.mxu0  ;;  %1026 = vmatmul.mubr.msk.f32.vlgmr.msra.gmra.mxu1 %vm458_vm1, %v709_v29 }
 0x4ef   : > { %v710_v34 = vmul.f32 %v706_v31, %v695_v33 }
 0x4f1   : > { %1028 = vmatprep.mubr.msk.f32.mxu1 %vm458_vm1, %v710_v34 }
 0x4f2   : > { %1029 = vmatmul.mubr.msk.f32.gmra.mxu1 %vm458_vm1, %v711_v35 }
 0x5ae   : > { %v1027_v36 = vpop.f32.mrf.mxu1 }
 0x5b0   : > { %v798_v37 = vpop.f32.mrf.mxu1 }
 0x5b1   : > { %v817_v39 = vadd.f32 %v1027_v36, %v798_v37 }
 0x5b2   : > { %v1030_v38 = vpop.f32.mrf.mxu1 }
 0x5b4   : > { %v808_v40 = vpop.f32.mrf.mxu1 }
 0x5b5   : > { %v818_v41 = vadd.f32 %v817_v39, %v808_v40 }
 0x5b7   : > { %v819_v43 = vadd.f32 %v1030_v38, %v818_v41 }
 0x5b9   : > { %v827_v44 = vadd.f32 %v943_v42, %v819_v43 }
 0x5bb   : > { %828 = vst.msk [vmem:[%s1325_s19 + $0x10] sm:$0xff] %vm321_vm0, %v827_v44 }
 0x5bc   : > { %1146 = shalt.err (!%p1143_p0)
}
 0x5bd   : > { %s1147_s25 = scalar_lea.hbm %s1424_s18, 384  ;;  %s1151_s26 = scalar_lea.hbm %s1478_s8, 768 }
 0x5be   : > { %p1148_p1 = scmp.ne.s32.totalorder %s1424_s18, %s1147_s25  ;;  %p1152_p4 = scmp.lt.s32.totalorder %s1424_s18, %s1478_s8 }
 0x5bf   : > { %p1153_p7 = scmp.lt.s32.totalorder %s1151_s26, %s1147_s25 }
 0x5c0   : > { %p1149_p2 = pnand %p1148_p1, %p1288_p5 }
 0x5c1   : > { %p1154_p6 = por %p1153_p7, %p1152_p4 }
 0x5c2   : > { %p1150_p3 = pneg %p1149_p2 }
 0x5c4   : > { %p1155_p8 = pnand %p1154_p6, %p1150_p3 }
 0x5c6   : > { %1158 = shalt.err (!%p1155_p8)
}
 0x5c7   : > { %s1203_s13 = smov 128   ;;  %s1204_s17 = smov 8  }
 0x5c8   : > { %1037 = dma.vmem_to_hbm [thread:$0]  (%p1288_p5), %s1419_s24, 384, %s1424_s18, %s1430_s9, %s1203_s13, %s1203_s13, %s1204_s17  }
 0x5c9 PF: > { %p1049_p9 = scmp.ge.s32.totalorder %s1197_s30, 2  ;;  %s858_s20 = sand.u32 1, %s1185_s27  }
 0x5ca   : > { %p1482_p10 = scmp.ne.s32.totalorder %s1480_s16, 0  ;;  %s859_s21 = scalar_lea.sflag [#allocation4], %s858_s20 }
 0x5cc   : > { %p1044_p11 = pnand %p1049_p9, %p1482_p10 }
 0x5ce   : > { %p1045_p12 = pneg %p1044_p11 }
 0x5d0   : > { %1180 = dma.done.wait (%p1045_p12), %s859_s21, 384  }
 0x5d1   : > { %1182 = vsyncadd (%p1045_p12), %s859_s21, 4294966912  ;;  %p19_p13 = scmp.ge.s32.totalorder %s1275_s11, 4   ;;  %s1483_s27 = smov %s1189_s28 }
 0x5d2   : > { %s1484_s28 = smov %s1193_s29  ;;  %s1485_s29 = smov %s1286_s14 }
 0x5d3   : > { %s1486_s30 = smov %s1275_s11  ;;  %21 = sbr.rel (!%p19_p13) target bundleno = 4 (0x4), region = 92 }
 0x5d8   :  { %864 = vsyncpa [#allocation3], 1 }
 0x5d9   :  { %866 = vsyncpa [#allocation3 + $0x1], 1 }
 0x5da   :  { %867 = vsyncpa [#allocation4], 1 }
 0x5db   :  { %869 = vsyncpa [#allocation4 + $0x1], 1 }

</bundles_post_ra>
